<compile_context>
chip_gen: v6e
topology: v6e:2x2x1
jax: 0.10.0
libtpu: 0.0.40
codegen_flags: <defaults>
</compile_context>

<pallas_src>
import jax
import jax.numpy as jnp
from jax.experimental import pallas as pl
from jax.experimental.pallas import tpu as pltpu

_LANES = 128
_ACC_SUBLANES = 8                        # f32 accumulator tile height
_DEFAULT_MAX_BLOCK_ROWS = 2048           # 2048 x 128 f32 = 1 MiB / stream / buffer
_DEFAULT_MIN_PALLAS_ELEMS = 256 * 1024   # below this, plain jnp is faster
_VMEM_LIMIT_BYTES = 32 * 1024 * 1024     # safe on v5e / v6e / v7x


def _mse_sq_kernel(o_ref, t_ref, out_ref, acc_ref):
    """Unweighted: acc(8,128) += sublane-folded (o - t)^2; reduce at the end."""
    j = pl.program_id(0)

    @pl.when(j == 0)
    def _():
        acc_ref[...] = jnp.zeros_like(acc_ref)

    d = o_ref[...].astype(jnp.float32) - t_ref[...].astype(jnp.float32)
    sq = d * d
    m = sq.shape[0] // _ACC_SUBLANES
    acc_ref[...] += jnp.sum(sq.reshape(m, _ACC_SUBLANES, _LANES), axis=0)

    @pl.when(j == pl.num_programs(0) - 1)
    def _():
        out_ref[...] = jnp.sum(acc_ref[...], axis=0, keepdims=True)


def _mse_sq_kernel_w(o_ref, t_ref, w_ref, out_ref, acc_ref):
    """Weighted: acc(8,128) += sublane-folded ((o - t) * w)^2; reduce at end."""
    j = pl.program_id(0)

    @pl.when(j == 0)
    def _():
        acc_ref[...] = jnp.zeros_like(acc_ref)

    d = o_ref[...].astype(jnp.float32) - t_ref[...].astype(jnp.float32)
    d = d * w_ref[...].astype(jnp.float32)
    sq = d * d
    m = sq.shape[0] // _ACC_SUBLANES
    acc_ref[...] += jnp.sum(sq.reshape(m, _ACC_SUBLANES, _LANES), axis=0)

    @pl.when(j == pl.num_programs(0) - 1)
    def _():
        out_ref[...] = jnp.sum(acc_ref[...], axis=0, keepdims=True)


def _cdiv(a, b):
    return -(-a // b)


def _sublane_pack(dtype):
    """Packed sublane tile height for a dtype (8 f32 / 16 bf16 / 32 int8)."""
    return max(8, 32 // jnp.dtype(dtype).itemsize)


def _sq_sum_jnp(o, t, w=None):
    d = o.astype(jnp.float32) - t.astype(jnp.float32)
    if w is not None:
        d = d * w.astype(jnp.float32)
    return jnp.sum(d * d)


def mse_loss(output, target, target_weight=None, *, use_target_weight=False,
             loss_weight=1.0,
             max_block_rows=_DEFAULT_MAX_BLOCK_ROWS,
             min_pallas_elems=_DEFAULT_MIN_PALLAS_ELEMS):
    """Pallas TPU implementation of mmpose MSELoss.forward ('mean' reduction)."""
    assert output.shape == target.shape
    n_elem = int(output.size)

    w = None
    if use_target_weight:
        assert target_weight is not None
        w = target_weight
        if w.shape != output.shape:
            # mmpose commonly passes (N, K, 1); mirror torch broadcasting.
            # TODO(synk): stream the small weight array and broadcast in-kernel
            # instead of materializing a full-size weight for the Pallas path.
            w = jnp.broadcast_to(w, output.shape)

    # ---- dtype-aware alignment (lane * packed-sublane granularity) ----
    pack = max(_sublane_pack(output.dtype), _sublane_pack(target.dtype))
    if w is not None:
        pack = max(pack, _sublane_pack(w.dtype))
    align = _LANES * pack
    n_aligned = (n_elem // align) * align
    rows_avail = n_aligned // _LANES

    # ---- small-input fast path: one fused elementwise + reduce, no Pallas ----
    if n_elem < min_pallas_elems or rows_avail < pack:
        total = _sq_sum_jnp(output, target, w)
        return (total / jnp.float32(n_elem)) * jnp.float32(loss_weight)

    # ---- block sizing: steps * block_rows <= rows_avail, no zero padding ----
    max_block_rows = max(pack, (max_block_rows // pack) * pack)
    steps_target = _cdiv(rows_avail, max_block_rows)
    block_rows = max(pack, ((rows_avail // steps_target) // pack) * pack)
    block_rows = min(block_rows, max_block_rows)
    steps = rows_avail // block_rows
    rows_main = steps * block_rows
    n_main = rows_main * _LANES

    # ---- flatten (free reshape) + aligned prefix views ----
    o_flat = jnp.reshape(output, (-1,))
    t_flat = jnp.reshape(target, (-1,))
    o2 = jnp.reshape(o_flat[:n_main], (rows_main, _LANES))
    t2 = jnp.reshape(t_flat[:n_main], (rows_main, _LANES))
    operands = [o2, t2]
    w_flat = None
    if w is not None:
        w_flat = jnp.reshape(w, (-1,))
        operands.append(jnp.reshape(w_flat[:n_main], (rows_main, _LANES)))

    # 3-deep input buffering once the grid is long enough to benefit.
    if steps >= 4:
        in_spec = pl.BlockSpec((block_rows, _LANES), lambda j: (j, 0),
                               pipeline_mode=pl.Buffered(3))
    else:
        in_spec = pl.BlockSpec((block_rows, _LANES), lambda j: (j, 0))

    kernel = _mse_sq_kernel_w if w is not None else _mse_sq_kernel

    # TODO(synk): on v7x, shard the step axis across both TensorCores
    # (dimension_semantics=CORE_PARALLEL) once chip detection is reliable.
    partials = pl.pallas_call(
        kernel,
        out_shape=jax.ShapeDtypeStruct((1, _LANES), jnp.float32),
        grid_spec=pltpu.PrefetchScalarGridSpec(
            num_scalar_prefetch=0,
            grid=(steps,),
            in_specs=[in_spec] * len(operands),
            out_specs=pl.BlockSpec((1, _LANES), lambda j: (0, 0)),
            scratch_shapes=[pltpu.VMEM((_ACC_SUBLANES, _LANES), jnp.float32)],
        ),
        compiler_params=pltpu.CompilerParams(
            dimension_semantics=("arbitrary",),
            vmem_limit_bytes=_VMEM_LIMIT_BYTES),
    )(*operands)

    total = jnp.sum(partials)

    # Ragged tail + sub-block leftover: one tiny fused jnp reduce; no padding,
    # no extra full-array copy.
    if n_main < n_elem:
        total = total + _sq_sum_jnp(
            o_flat[n_main:], t_flat[n_main:],
            w_flat[n_main:] if w_flat is not None else None)

    return (total / jnp.float32(n_elem)) * jnp.float32(loss_weight)


if __name__ == "__main__":
    key = jax.random.PRNGKey(0)
    k1, k2, k3, k4, k5, k6, k7, k8, k9, k10 = jax.random.split(key, 10)

    # 1) Typical mmpose shape (N=2, K=8, 2) -> small-input jnp fast path.
    o1 = jax.random.normal(k1, (2, 8, 2), dtype=jnp.float32)
    t1 = jax.random.normal(k2, (2, 8, 2), dtype=jnp.float32)
    w1 = jax.random.uniform(k3, (2, 8, 2), dtype=jnp.float32)
    loss1 = jax.block_until_ready(
        mse_loss(o1, t1, w1, use_target_weight=True, loss_weight=0.5))
    ref1 = jnp.mean((o1 * w1 - t1 * w1) ** 2) * 0.5
    assert jnp.allclose(loss1, ref1, rtol=1e-5, atol=1e-6), (loss1, ref1)

    # 2) Pallas path: weighted, broadcast (N, K, 1) weight, ragged tail,
    #    multi-step grid (small block cap forces steps > 1).
    o2 = jax.random.normal(k4, (64, 17, 2), dtype=jnp.float32)
    t2 = jax.random.normal(k5, (64, 17, 2), dtype=jnp.float32)
    w2 = jax.random.uniform(k6, (64, 17, 1), dtype=jnp.float32)
    loss2 = jax.block_until_ready(
        mse_loss(o2, t2, w2, use_target_weight=True, loss_weight=1.0,
                 max_block_rows=8, min_pallas_elems=0))
    wb = jnp.broadcast_to(w2, o2.shape)
    ref2 = jnp.mean((o2 * wb - t2 * wb) ** 2)
    assert jnp.allclose(loss2, ref2, rtol=1e-5, atol=1e-6), (loss2, ref2)

    # 3) Pallas path: unweighted, steps >= 4 (exercises Buffered(3) inputs)
    #    plus a ragged tail handled by the jnp epilogue.
    o3 = jax.random.normal(k7, (256, 33, 2), dtype=jnp.float32)
    t3 = jax.random.normal(k8, (256, 33, 2), dtype=jnp.float32)
    loss3 = jax.block_until_ready(
        mse_loss(o3, t3, use_target_weight=False, loss_weight=1.0,
                 max_block_rows=32, min_pallas_elems=0))
    ref3 = jnp.mean((o3 - t3) ** 2)
    assert jnp.allclose(loss3, ref3, rtol=1e-5, atol=1e-6), (loss3, ref3)

    # 4) bf16 inputs (16-row packed sublane tile), single-step grid.
    o4 = jax.random.normal(k9, (128, 32, 2), dtype=jnp.bfloat16)
    t4 = jax.random.normal(k10, (128, 32, 2), dtype=jnp.bfloat16)
    loss4 = jax.block_until_ready(
        mse_loss(o4, t4, use_target_weight=False, loss_weight=1.0,
                 min_pallas_elems=0))
    ref4 = jnp.mean((o4.astype(jnp.float32) - t4.astype(jnp.float32)) ** 2)
    assert jnp.allclose(loss4, ref4, rtol=1e-4, atol=1e-5), (loss4, ref4)

    print("KERNEL_OK")
</pallas_src>

<mosaic_0001>
module attributes {stable_mosaic.version = 11 : i64} {
  func.func @_mse_sq_kernel_w(%arg0: i32, %arg1: memref<8x128xf32, #tpu.memory_space<vmem>>, %arg2: memref<8x128xf32, #tpu.memory_space<vmem>>, %arg3: memref<8x128xf32, #tpu.memory_space<vmem>>, %arg4: memref<1x128xf32, #tpu.memory_space<vmem>>, %arg5: memref<8x128xf32, #tpu.memory_space<vmem>>) attributes {dimension_semantics = [#tpu.dimension_semantics<arbitrary>], iteration_bounds = array<i64: 2>, scalar_prefetch = 0 : i64, scratch_operands = 1 : i64, tpu.core_type = #tpu.core_type<tc>, window_params = [{transform_indices = @transform_0, window_bounds = array<i64: 8, 128>}, {transform_indices = @transform_1, window_bounds = array<i64: 8, 128>}, {transform_indices = @transform_2, window_bounds = array<i64: 8, 128>}, {pipeline_mode = #tpu.pipeline_mode<synchronous>, transform_indices = @transform_3, window_bounds = array<i64: 1, 128>}]} {
    %c0_i32 = arith.constant 0 : i32
    %0 = arith.cmpi eq, %arg0, %c0_i32 : i32
    %1 = arith.extui %0 : i1 to i32
    %c0_i32_0 = arith.constant 0 : i32
    %2 = arith.cmpi ne, %1, %c0_i32_0 : i32
    scf.if %2 {
      %cst_11 = arith.constant 0.000000e+00 : f32
      %17 = vector.broadcast %cst_11 : f32 to vector<8x128xf32>
      %c0_12 = arith.constant 0 : index
      %c0_13 = arith.constant 0 : index
      %18 = vector.load %arg5[%c0_12, %c0_13] : memref<8x128xf32, #tpu.memory_space<vmem>>, vector<8x128xf32>
      tpu.vector_store %arg5[%c0_12, %c0_13], %17 {strides = array<i32>} : memref<8x128xf32, #tpu.memory_space<vmem>>, vector<8x128xf32>,
    } else {
    }
    %c0 = arith.constant 0 : index
    %c0_1 = arith.constant 0 : index
    %3 = vector.load %arg1[%c0, %c0_1] : memref<8x128xf32, #tpu.memory_space<vmem>>, vector<8x128xf32>
    %c0_2 = arith.constant 0 : index
    %c0_3 = arith.constant 0 : index
    %4 = vector.load %arg2[%c0_2, %c0_3] : memref<8x128xf32, #tpu.memory_space<vmem>>, vector<8x128xf32>
    %5 = arith.subf %3, %4 : vector<8x128xf32>
    %c0_4 = arith.constant 0 : index
    %c0_5 = arith.constant 0 : index
    %6 = vector.load %arg3[%c0_4, %c0_5] : memref<8x128xf32, #tpu.memory_space<vmem>>, vector<8x128xf32>
    %7 = arith.mulf %5, %6 : vector<8x128xf32>
    %8 = arith.mulf %7, %7 : vector<8x128xf32>
    %c0_6 = arith.constant 0 : index
    %c0_7 = arith.constant 0 : index
    %9 = vector.load %arg5[%c0_6, %c0_7] : memref<8x128xf32, #tpu.memory_space<vmem>>, vector<8x128xf32>
    %10 = vector.shape_cast %8 : vector<8x128xf32> to vector<1x8x128xf32>
    %cst = arith.constant dense<0.000000e+00> : vector<8x128xf32>
    %11 = vector.multi_reduction <add>, %10, %cst [0] : vector<1x8x128xf32> to vector<8x128xf32>
    %12 = arith.addf %9, %11 : vector<8x128xf32>
    %c0_8 = arith.constant 0 : index
    %c0_9 = arith.constant 0 : index
    %13 = vector.load %arg5[%c0_8, %c0_9] : memref<8x128xf32, #tpu.memory_space<vmem>>, vector<8x128xf32>
    tpu.vector_store %arg5[%c0_8, %c0_9], %12 {strides = array<i32>} : memref<8x128xf32, #tpu.memory_space<vmem>>, vector<8x128xf32>,
    %c1_i32 = arith.constant 1 : i32
    %14 = arith.cmpi eq, %arg0, %c1_i32 : i32
    %15 = arith.extui %14 : i1 to i32
    %c0_i32_10 = arith.constant 0 : i32
    %16 = arith.cmpi ne, %15, %c0_i32_10 : i32
    scf.if %16 {
      %c0_11 = arith.constant 0 : index
      %c0_12 = arith.constant 0 : index
      %17 = vector.load %arg5[%c0_11, %c0_12] : memref<8x128xf32, #tpu.memory_space<vmem>>, vector<8x128xf32>
      %cst_13 = arith.constant dense<0.000000e+00> : vector<128xf32>
      %18 = vector.multi_reduction <add>, %17, %cst_13 [0] : vector<8x128xf32> to vector<128xf32>
      %19 = vector.shape_cast %18 : vector<128xf32> to vector<1x128xf32>
      %c0_14 = arith.constant 0 : index
      %c0_15 = arith.constant 0 : index
      %20 = vector.load %arg4[%c0_14, %c0_15] : memref<1x128xf32, #tpu.memory_space<vmem>>, vector<1x128xf32>
      tpu.vector_store %arg4[%c0_14, %c0_15], %19 {strides = array<i32>} : memref<1x128xf32, #tpu.memory_space<vmem>>, vector<1x128xf32>,
    } else {
    }
    return
  }
  func.func @transform_0(%arg0: i32) -> (i32, i32) {
    %c0_i32 = arith.constant 0 : i32
    %c0_i32_0 = arith.constant 0 : i32
    return %arg0, %c0_i32 : i32, i32
  }
  func.func @transform_1(%arg0: i32) -> (i32, i32) {
    %c0_i32 = arith.constant 0 : i32
    %c0_i32_0 = arith.constant 0 : i32
    return %arg0, %c0_i32 : i32, i32
  }
  func.func @transform_2(%arg0: i32) -> (i32, i32) {
    %c0_i32 = arith.constant 0 : i32
    %c0_i32_0 = arith.constant 0 : i32
    return %arg0, %c0_i32 : i32, i32
  }
  func.func @transform_3(%arg0: i32) -> (i32, i32) {
    %c0_i32 = arith.constant 0 : i32
    %c0_i32_0 = arith.constant 0 : i32
    %c0_i32_1 = arith.constant 0 : i32
    return %c0_i32, %c0_i32_0 : i32, i32
  }
}

</mosaic_0001>

<bundles_post_ra>
// kernel: tpu_custom_call.1
= control target key start
LH: loop header
LB: loop body
LE: loop exit
PB: predicated region body
PF: predicated region fallthrough
CT: control target
= control target key end

     0   :  { %8 = vsyncpa [#allocation4], 0  ;;  %s808_s0 = inlined_call_operand.hbm [shape: f32[16,128], index: 0, kind: input, shape index: {}]   ;;  %s809_s1 = inlined_call_operand.hbm [shape: f32[16,128], index: 1, kind: input, shape index: {}]   ;;  %s810_s2 = inlined_call_operand.hbm [shape: f32[16,128], index: 2, kind: input, shape index: {}]   ;;  %s811_s3 = inlined_call_operand.hbm [shape: f32[1,128], index: 3, kind: output, shape index: {}]  }
   0x1   :  { %10 = vsyncpa [#allocation4 + $0x1], 0 }
   0x2   :  { %11 = vsyncpa [#allocation7], 0 }
   0x3   :  { %13 = vsyncpa [#allocation7 + $0x1], 0 }
   0x4   :  { %14 = vsyncpa [#allocation5], 0  ;;  %s625_s12 = smov 0   ;;  %s627_s13 = smov 0  }
   0x5   :  { %s629_s14 = smov 0   ;;  %s631_s15 = smov 0  }
   0x6 LB: > { %s644_s16 = sadd.s32 4294967295, %s598_s15   ;;  %s647_s17 = sadd.s32 1, %s598_s15   ;;  %s598_s15 = sphi %s631_s15, %s824_s15   ;;  %s594_s14 = sphi %s629_s14, %s823_s14   ;;  %s590_s13 = sphi %s627_s13, %s822_s13   ;;  %s586_s12 = sphi %s625_s12, %s821_s12  }
   0x7   : > { %s24_s18 = ssub.s32 %s598_s15, %s647_s17  ;;  %s27_s19 = sadd.s32 1, %s594_s14 }
   0x8   : > { %p25_p0 = scmp.eq.s32.totalorder %s24_s18, 0  ;;  %p34_p1 = scmp.ne.s32.totalorder %s594_s14, %s590_s13 }
   0x9   : > { %p35_p2 = scmp.eq.s32.totalorder %s598_s15, 0  ;;  %p40_p3 = scmp.ne.s32.totalorder %s590_s13, %s586_s12 }
   0xa   : > { %s657_s20 = scalar_select %p25_p0, %s594_s14, %s27_s19  }
   0xb   : > { %p36_p4 = por %p35_p2, %p34_p1  ;;  %p41_p5 = scmp.eq.s32.totalorder %s644_s16, 0 }
   0xc   : > { %p411_p6 = scmp.lt.s32.totalorder %s598_s15, 2  ;;  %s137_s22 = sand.u32 1, %s594_s14  }
   0xd   : > { %p661_p7 = por %p41_p5, %p40_p3  ;;  %s668_s23 = sshll.u32 %s137_s22, 3 }
   0xe   : > { %s671_s24 = sshll.u32 %s598_s15, 7  ;;  %p673_p8 = pnand %p411_p6, %p36_p4 }
   0xf   : > { %s813_s21 = scalar_select %p661_p7, 1, 0 }
  0x10   : > { %s155_s26 = sand.u32 1, %s598_s15   ;;  %s682_s29 = scalar_lea.hbm %s809_s1, %s671_s24 }
  0x11   : > { %s159_s30 = scalar_lea.vmem [#allocation6], %s668_s23  ;;  %s687_s5 = scalar_lea.sflag [#allocation7], %s155_s26 }
  0x12   : > { %s166_s4 = sshll.u32 %s159_s30, 4  ;;  %s448_s6 = scalar_lea.hbm %s682_s29, 128  ;;  %s167_s4 = int_to_ptr.vmem [resolvable:$true] %s166_s4 }
  0x13   : > { %p449_p11 = scmp.ne.s32.totalorder %s682_s29, %s448_s6  ;;  %p693_p12 = pneg %p673_p8 }
  0x14   : > { %s453_s10 = scalar_lea.hbm %s809_s1, 256  ;;  %p454_p1 = scmp.lt.s32.totalorder %s682_s29, %s809_s1 }
  0x15   : > { %p451_p13 = pnand %p693_p12, %p449_p11  ;;  %p455_p2 = scmp.lt.s32.totalorder %s453_s10, %s448_s6 }
  0x17   : > { %p452_p0 = pneg %p451_p13  ;;  %p456_p3 = por %p455_p2, %p454_p1 }
  0x19   : > { %p457_p4 = pnand %p456_p3, %p452_p0 }
  0x1b   : > { %460 = shalt.err (!%p457_p4)
}
  0x1c   : > { %s461_s18 = scalar_lea.vmem %s167_s4, 128  ;;  %s600_s19 = smov [#allocation6]  }
  0x1d   : > { %p462_p5 = scmp.ne.s32.totalorder %s167_s4, %s461_s18  ;;  %s466_s26 = sshll.u32 %s600_s19, 4  ;;  %s467_s26 = int_to_ptr.vmem [resolvable:$false] %s466_s26 }
  0x1e   : > { %s468_s27 = scalar_lea.vmem %s467_s26, 256  ;;  %p469_p11 = scmp.lt.s32.totalorder %s167_s4, %s467_s26 }
  0x1f   : > { %p464_p6 = pnand %p462_p5, %p693_p12  ;;  %p470_p13 = scmp.lt.s32.totalorder %s468_s27, %s461_s18 }
  0x21   : > { %p465_p9 = pneg %p464_p6  ;;  %p471_p10 = por %p470_p13, %p469_p11 }
  0x23   : > { %p472_p7 = pnand %p471_p10, %p465_p9 }
  0x25   : > { %475 = shalt.err (!%p472_p7)
}
  0x26   : > { %407 = dma.hbm_to_vmem [thread:$0]  (!%p673_p8), %s682_s29, 128, %s167_s4, %s687_s5  }
  0x27   : > { %p816_p0 = scmp.lt.s32.totalorder %s598_s15, 3  ;;  %p817_p1 = scmp.ge.s32.totalorder %s598_s15, 1 }
  0x28   : > { %s724_s8 = scalar_lea.hbm %s808_s0, %s671_s24  ;;  %s141_s9 = scalar_lea.vmem [#allocation3], %s668_s23 }
  0x29   : > { %p716_p2 = pnand %p817_p1, %p816_p0  ;;  %s148_s10 = sshll.u32 %s141_s9, 4  ;;  %s149_s10 = int_to_ptr.vmem [resolvable:$true] %s148_s10 }
  0x2a   : > { %s731_s29 = scalar_lea.hbm %s810_s2, %s671_s24  ;;  %s138_s15 = scalar_lea.sflag [#allocation4], %s137_s22 }
  0x2b   : > { %s818_s28 = scalar_select %p716_p2, 1, 0 }
  0x2c   : > { %s476_s4 = scalar_lea.hbm %s724_s8, 128  ;;  %s481_s26 = scalar_lea.hbm %s808_s0, 256 }
  0x2d   : > { %p477_p7 = scmp.ne.s32.totalorder %s724_s8, %s476_s4  ;;  %p482_p3 = scmp.lt.s32.totalorder %s724_s8, %s808_s0 }
  0x2e   : > { %p483_p4 = scmp.lt.s32.totalorder %s481_s26, %s476_s4 }
  0x2f   : > { %p479_p9 = pnand %p477_p7, %p693_p12 }
  0x30   : > { %p484_p5 = por %p483_p4, %p482_p3 }
  0x31   : > { %p480_p10 = pneg %p479_p9 }
  0x33   : > { %p485_p6 = pnand %p484_p5, %p480_p10 }
  0x35   : > { %488 = shalt.err (!%p485_p6)
}
  0x36   : > { %s489_s24 = scalar_lea.vmem %s149_s10, 128  ;;  %s601_s22 = smov [#allocation3]  }
  0x37   : > { %p490_p11 = scmp.ne.s32.totalorder %s149_s10, %s489_s24  ;;  %s494_s6 = sshll.u32 %s601_s22, 4  ;;  %s495_s6 = int_to_ptr.vmem [resolvable:$false] %s494_s6 }
  0x38   : > { %s496_s9 = scalar_lea.vmem %s495_s6, 256  ;;  %p497_p1 = scmp.lt.s32.totalorder %s149_s10, %s495_s6 }
  0x39   : > { %p492_p13 = pnand %p490_p11, %p693_p12  ;;  %p498_p7 = scmp.lt.s32.totalorder %s496_s9, %s489_s24 }
  0x3b   : > { %p493_p0 = pneg %p492_p13  ;;  %p499_p9 = por %p498_p7, %p497_p1 }
  0x3d   : > { %p500_p2 = pnand %p499_p9, %p493_p0 }
  0x3f   : > { %503 = shalt.err (!%p500_p2)
}
  0x40   : > { %404 = dma.hbm_to_vmem [thread:$0]  (!%p673_p8), %s724_s8, 128, %s149_s10, %s138_s15  }
  0x41   : > { %s177_s11 = scalar_lea.vmem [#allocation8], %s668_s23  ;;  %s504_s4 = scalar_lea.hbm %s731_s29, 128 }
  0x42   : > { %s184_s12 = sshll.u32 %s177_s11, 4  ;;  %p505_p10 = scmp.ne.s32.totalorder %s731_s29, %s504_s4  ;;  %s185_s12 = int_to_ptr.vmem [resolvable:$true] %s184_s12 }
  0x43   : > { %s509_s26 = scalar_lea.hbm %s810_s2, 256  ;;  %p510_p2 = scmp.lt.s32.totalorder %s731_s29, %s810_s2 }
  0x44   : > { %p507_p3 = pnand %p505_p10, %p693_p12  ;;  %p511_p5 = scmp.lt.s32.totalorder %s509_s26, %s504_s4 }
  0x46   : > { %p508_p4 = pneg %p507_p3  ;;  %p512_p6 = por %p511_p5, %p510_p2 }
  0x48   : > { %p513_p11 = pnand %p512_p6, %p508_p4 }
  0x4a   : > { %516 = shalt.err (!%p513_p11)
}
  0x4b   : > { %s517_s23 = scalar_lea.vmem %s185_s12, 128  ;;  %s602_s8 = smov [#allocation8]  }
  0x4c   : > { %p518_p13 = scmp.ne.s32.totalorder %s185_s12, %s517_s23  ;;  %s522_s10 = sshll.u32 %s602_s8, 4  ;;  %s523_s10 = int_to_ptr.vmem [resolvable:$false] %s522_s10 }
  0x4d   : > { %s524_s15 = scalar_lea.vmem %s523_s10, 256  ;;  %p525_p7 = scmp.lt.s32.totalorder %s185_s12, %s523_s10 }
  0x4e   : > { %p520_p0 = pnand %p518_p13, %p693_p12  ;;  %p526_p9 = scmp.lt.s32.totalorder %s524_s15, %s517_s23 }
  0x50   : > { %p521_p1 = pneg %p520_p0  ;;  %p527_p10 = por %p526_p9, %p525_p7 }
  0x52   : > { %p528_p3 = pnand %p527_p10, %p521_p1 }
  0x54   : > { %531 = shalt.err (!%p528_p3)
}
  0x55   : > { %410 = dma.hbm_to_vmem [thread:$0]  (!%p673_p8), %s731_s29, 128, %s185_s12, %s687_s5  }
  0x56   : > { %p819_p4 = scmp.ne.s32.totalorder %s818_s28, 0 }
  0x57   : > { %s195_s7 = sand.u32 (!%p819_p4), 1, %s590_s13   ;;  %p820_p12 = scmp.ne.s32.totalorder (!%p819_p4), %s813_s21, 0 }
  0x58   : > { %193 = sbr.rel (%p819_p4) target bundleno = 151 (0x97), region = 32  ;;  %s382_s24 = sshll.u32 (!%p819_p4), %s195_s7, 3 }
  0x59   : > { %s196_s22 = scalar_lea.sflag (!%p819_p4), [#allocation4], %s195_s7  ;;  %s199_s6 = scalar_lea.vmem (!%p819_p4), [#allocation3], %s382_s24 }
  0x5d   : > { %573 = dma.done.wait (%p820_p12), %s196_s22, 128  }
  0x5e   : > { %575 = vsyncadd (%p820_p12), %s196_s22, 4294967168  ;;  %s204_s25 = sand.u32 1, %s644_s16   ;;  %s208_s11 = scalar_lea.vmem [#allocation6], %s382_s24 }
  0x5f   : > { %s205_s9 = scalar_lea.sflag [#allocation7], %s204_s25 }
  0x60   : > { %577 = dma.done.wait (%p820_p12), %s205_s9, 256  }
  0x61   : > { %579 = vsyncadd (%p820_p12), %s205_s9, 4294967040  ;;  %s217_s5 = scalar_lea.vmem [#allocation8], %s382_s24  ;;  %p385_p8 = scmp.ne.s32.totalorder %s644_s16, 0 }
  0x63   : > { %248 = sbr.rel (%p385_p8) target bundleno = 106 (0x6a), region = 48 }
  0x68   : > { %v603_v0 = vmov 0.0  }
  0x69   : > { %249 = vst [vmem:[#allocation2] sm:$0xff] %v603_v0 }
  0x6a PF: > { %v250_v1 = vld [vmem:[%s199_s6] sm:$0xff]  ;;  %v251_v2 = vld [vmem:[%s208_s11] sm:$0xff]  ;;  %p386_p2 = scmp.ne.s32.totalorder %s644_s16, 1 }
  0x6b   : > { %v253_v3 = vld [vmem:[%s217_s5] sm:$0xff]  ;;  %v252_v4 = vsub.f32 %v250_v1, %v251_v2 }
  0x6d   : > { %v254_v5 = vmul.f32 %v253_v3, %v252_v4 }
  0x6f   : > { %v255_v7 = vmul.f32 %v254_v5, %v254_v5  ;;  %263 = sbr.rel (%p386_p2) target bundleno = 136 (0x88), region = 52 }
  0x70   : > { %v256_v6 = vld [vmem:[#allocation2] sm:$0xff] }
  0x71   : > { %v258_v8 = vadd.f32 %v256_v6, %v255_v7 }
  0x73   : > { %259 = vst [vmem:[#allocation2] sm:$0xff] %v258_v8 }
  0x7a   : > { %v264_v9 = vld [vmem:[#allocation2] sm:$0xff] }
  0x7b   : > { %v265_v10 = vrot.slane %v264_v9, 4 }
  0x7d   : > { %v266_v11 = vadd.f32 %v265_v10, %v264_v9 }
  0x7f   : > { %v267_v12 = vrot.slane %v266_v11, 2 }
  0x81   : > { %v268_v13 = vadd.f32 %v267_v12, %v266_v11 }
  0x83   : > { %v269_v14 = vrot.slane %v268_v13, 1 }
  0x85   : > { %v270_v15 = vadd.f32 %v269_v14, %v268_v13 }
  0x87   : > { %271 = vst [vmem:[#allocation9] sm:$0x1] %v270_v15 }
  0x88 PF: > { %p412_p5 = scmp.eq.s32.totalorder %s644_s16, 1  ;;  %s604_s21 = smov [#allocation9]  }
  0x89   : > { %s279_s28 = sshll.u32 %s604_s21, 4  ;;  %s280_s28 = int_to_ptr.vmem [resolvable:$true] %s279_s28 }
  0x8a   : > { %s532_s29 = scalar_lea.vmem %s280_s28, 16  ;;  %s538_s12 = scalar_lea.vmem %s280_s28, 32 }
  0x8b   : > { %p533_p6 = scmp.ne.s32.totalorder %s280_s28, %s532_s29  ;;  %p539_p0 = scmp.lt.s32.totalorder %s280_s28, %s280_s28 }
  0x8c   : > { %p540_p1 = scmp.lt.s32.totalorder %s538_s12, %s532_s29 }
  0x8d   : > { %p534_p11 = pnand %p533_p6, %p412_p5 }
  0x8e   : > { %p541_p7 = por %p540_p1, %p539_p0 }
  0x8f   : > { %p535_p13 = pneg %p534_p11 }
  0x91   : > { %p542_p9 = pnand %p541_p7, %p535_p13 }
  0x93   : > { %545 = shalt.err (!%p542_p9)
}
  0x94   : > { %398 = dma.vmem_to_hbm [thread:$0]  (%p412_p5), %s280_s28, 16, %s811_s3, [#allocation5]  }
  0x95   : > { %581 = dma.done.wait (%p412_p5), [#allocation5], 16  }
  0x96   : > { %583 = vsyncadd (%p412_p5), [#allocation5], 4294967280 }
  0x97 PF: > { %p17_p10 = scmp.ge.s32.totalorder %s647_s17, 4   ;;  %s821_s12 = smov %s590_s13 }
  0x98   : > { %s822_s13 = smov %s594_s14  ;;  %s823_s14 = smov %s657_s20 }
  0x99   : > { %s824_s15 = smov %s647_s17  ;;  %19 = sbr.rel (!%p17_p10) target bundleno = 6 (0x6), region = 101 }
  0x9e   :  { %292 = vsyncpa [#allocation4], 1 }
  0x9f   :  { %294 = vsyncpa [#allocation4 + $0x1], 1 }
  0xa0   :  { %295 = vsyncpa [#allocation7], 1 }
  0xa1   :  { %297 = vsyncpa [#allocation7 + $0x1], 1 }
  0xa2   :  { %298 = vsyncpa [#allocation5], 1 }
  0xa3   :  { %300 = vsyncpa [#allocation5 + $0x1], 1 }

</bundles_post_ra>
